<compile_context>
chip_gen: v6e
topology: v6e:2x2x1
jax: 0.10.0
libtpu: 0.0.40
codegen_flags: <defaults>
</compile_context>

<pallas_src>
import functools

import jax
import jax.numpy as jnp
from jax import lax
from jax.experimental import pallas as pl
from jax.experimental.pallas import tpu as pltpu

SMOOTHING = 0.3
CONFIDENCE = 1.0 - SMOOTHING
_LANES = 128


def _imsitu_criterion_kernel(tgt_ref, img_ref, mask_ref, out_ref, *, num_classes):
    # Load in native dtype, upcast to f32 right away (v5e has no bf16 VPU/EUP;
    # LSE math stays in f32 on all chips).
    tgt = tgt_ref[...].astype(jnp.float32)    # (B, Cp)
    img = img_ref[...].astype(jnp.float32)    # (B, Cp)
    msk = mask_ref[...].astype(jnp.float32)   # (B, Cp)
    B, Cp = tgt.shape
    padded = Cp != num_classes                # static python bool

    col = lax.broadcasted_iota(jnp.int32, (1, Cp), 1)   # lane index row

    # gt_verbs = targets.max(1)[1] -> first-max index (torch semantics).
    # Padded target lanes are finfo.min (wrapper) so they never win the max.
    max_t = jnp.max(tgt, axis=-1, keepdims=True)
    gt = jnp.min(jnp.where(tgt == max_t, col, Cp), axis=-1, keepdims=True)   # (B, 1)
    onehot = col == gt                                                       # (B, Cp)

    # Fused log-softmax over both logit tensors: rows [0:B] = img, [B:2B] = mask.
    x = jnp.concatenate([img, msk], axis=0)            # (2B, Cp)
    oh = jnp.concatenate([onehot, onehot], axis=0)     # (2B, Cp)

    m = jnp.max(x, axis=-1, keepdims=True)             # (2B, 1)
    z = x - m
    se = jnp.sum(jnp.exp(z), axis=-1, keepdims=True)   # padded lanes -> exp ~ 0
    lse = jnp.log(se)                                  # (2B, 1)
    z_tgt = jnp.sum(jnp.where(oh, z, 0.0), axis=-1, keepdims=True)           # (2B, 1)
    if padded:
        sum_z = jnp.sum(jnp.where(col < num_classes, z, 0.0), axis=-1, keepdims=True)
    else:
        sum_z = jnp.sum(z, axis=-1, keepdims=True)

    # nll = -(logprob at target); smooth = -mean(logprobs) = lse - sum(z)/C
    nll = lse - z_tgt                                   # (2B, 1)
    smooth = lse - sum_z * (1.0 / num_classes)          # (2B, 1)
    per_sample = CONFIDENCE * nll + SMOOTHING * smooth  # (2B, 1)

    loss_img = jnp.mean(per_sample[:B])                 # scalar
    loss_mask = jnp.mean(per_sample[B:])                # scalar

    # accuracy(img_logits, gt, topk=(1,5)) in percent:
    # target is in the top-k iff fewer than k logits are strictly greater.
    # Reuses the NLL gather (z_tgt) — no extra masked select over (B, Cp).
    # TODO(synk): exact-tie ordering differs from torch.topk (irrelevant for float logits).
    greater = jnp.sum((z[:B] > z_tgt[:B]).astype(jnp.float32),
                      axis=-1, keepdims=True)           # (B, 1)
    top1 = jnp.mean((greater < 1.0).astype(jnp.float32)) * 100.0
    top5 = jnp.mean((greater < 5.0).astype(jnp.float32)) * 100.0

    # Pack all four scalars into one lane-dense row: lanes 0..3.
    lane = lax.broadcasted_iota(jnp.int32, (1, _LANES), 1)
    out_ref[...] = (jnp.where(lane == 0, 1.0, 0.0) * loss_img
                    + jnp.where(lane == 1, 1.0, 0.0) * loss_mask
                    + jnp.where(lane == 2, 1.0, 0.0) * top1
                    + jnp.where(lane == 3, 1.0, 0.0) * top5)


def imsitu_criterion(targets, img_outputs, mask_outputs):
    """targets: (B, C); img_outputs / mask_outputs: (B, 1, C). Any float dtype."""
    img_logits = jnp.squeeze(img_outputs, axis=1)
    mask_logits = jnp.squeeze(mask_outputs, axis=1)
    B, C = targets.shape

    # Pad the class dim to a lane multiple (SWiG: 504 -> 512) so every load,
    # compare and reduction in the kernel is unmasked. Pad with dtype-min so
    # padded lanes never win a max, contribute ~0 to sum(exp) and are masked
    # out of sum(z).
    Cp = ((C + _LANES - 1) // _LANES) * _LANES
    if Cp != C:
        def _pad(a):
            return jnp.pad(a, ((0, 0), (0, Cp - C)),
                           constant_values=jnp.finfo(a.dtype).min)
        targets = _pad(targets)
        img_logits = _pad(img_logits)
        mask_logits = _pad(mask_logits)

    bytes_in = B * Cp * (jnp.dtype(targets.dtype).itemsize
                         + jnp.dtype(img_logits.dtype).itemsize
                         + jnp.dtype(mask_logits.dtype).itemsize)
    cost = pl.CostEstimate(
        flops=int(20 * B * Cp),
        transcendentals=int(2 * B * Cp),
        bytes_accessed=int(bytes_in + _LANES * 4),
    )

    vmem_spec = pl.BlockSpec(memory_space=pltpu.MemorySpace.VMEM)
    packed = pl.pallas_call(
        functools.partial(_imsitu_criterion_kernel, num_classes=C),
        out_shape=jax.ShapeDtypeStruct((1, _LANES), jnp.float32),
        in_specs=[vmem_spec, vmem_spec, vmem_spec],
        out_specs=vmem_spec,
        cost_estimate=cost,
    )(targets, img_logits, mask_logits)

    top1 = packed[0, 2]
    top5 = packed[0, 3]
    return {
        "loss_img": packed[0, 0],
        "loss_mask": packed[0, 1],
        "verb_acc_top1": top1,
        "verb_acc_top5": top5,
        "mean_acc": jnp.mean(jnp.stack([top1, top5])),
    }


if __name__ == "__main__":
    # Small synthetic shapes: batch=8, num_verb_classes=504 (FAIR's verb count;
    # padded to 512 lanes inside the wrapper). Logits in bf16 (model-native).
    B, C = 8, 504
    key = jax.random.PRNGKey(0)
    k_t, k_i, k_m = jax.random.split(key, 3)

    targets = jax.random.normal(k_t, (B, C), dtype=jnp.float32)
    img_outputs = jax.random.normal(k_i, (B, 1, C), dtype=jnp.float32).astype(jnp.bfloat16)
    mask_outputs = jax.random.normal(k_m, (B, 1, C), dtype=jnp.float32).astype(jnp.bfloat16)

    out = imsitu_criterion(targets, img_outputs, mask_outputs)
    out = jax.tree_util.tree_map(jax.block_until_ready, out)

    # Pure-JAX reference of the same math (upcast the same bf16 values to f32).
    def ref(targets, img_outputs, mask_outputs):
        t = targets.astype(jnp.float32)
        gt = jnp.argmax(t, axis=1)

        def ls(x):
            lp = jax.nn.log_softmax(x.astype(jnp.float32), axis=-1)
            nll = -jnp.take_along_axis(lp, gt[:, None], axis=-1)[:, 0]
            sm = -jnp.mean(lp, axis=-1)
            return jnp.mean(CONFIDENCE * nll + SMOOTHING * sm)

        il = ls(img_outputs[:, 0])
        ml = ls(mask_outputs[:, 0])

        logits = img_outputs[:, 0].astype(jnp.float32)
        tl = jnp.take_along_axis(logits, gt[:, None], axis=-1)
        greater = jnp.sum((logits > tl).astype(jnp.float32), axis=-1)
        t1 = jnp.mean((greater < 1.0).astype(jnp.float32)) * 100.0
        t5 = jnp.mean((greater < 5.0).astype(jnp.float32)) * 100.0
        return il, ml, t1, t5

    ril, rml, rt1, rt5 = ref(targets, img_outputs, mask_outputs)
    assert jnp.allclose(out["loss_img"], ril, atol=2e-3), (out["loss_img"], ril)
    assert jnp.allclose(out["loss_mask"], rml, atol=2e-3), (out["loss_mask"], rml)
    assert jnp.allclose(out["verb_acc_top1"], rt1, atol=1e-3), (out["verb_acc_top1"], rt1)
    assert jnp.allclose(out["verb_acc_top5"], rt5, atol=1e-3), (out["verb_acc_top5"], rt5)

    print("KERNEL_OK")
</pallas_src>

<mosaic_0001>
module attributes {stable_mosaic.version = 11 : i64} {
  func.func @_imsitu_criterion_kernel(%arg0: memref<8x512xf32, #tpu.memory_space<vmem>>, %arg1: memref<8x512xbf16, #tpu.memory_space<vmem>>, %arg2: memref<8x512xbf16, #tpu.memory_space<vmem>>, %arg3: memref<1x128xf32, #tpu.memory_space<vmem>>) attributes {dimension_semantics = [], scalar_prefetch = 0 : i64, scratch_operands = 0 : i64, tpu.core_type = #tpu.core_type<tc>} {
    %c0 = arith.constant 0 : index
    %c0_0 = arith.constant 0 : index
    %0 = vector.load %arg0[%c0, %c0_0] : memref<8x512xf32, #tpu.memory_space<vmem>>, vector<8x512xf32>
    %c0_1 = arith.constant 0 : index
    %c0_2 = arith.constant 0 : index
    %1 = vector.load %arg1[%c0_1, %c0_2] : memref<8x512xbf16, #tpu.memory_space<vmem>>, vector<8x512xbf16>
    %2 = arith.extf %1 : vector<8x512xbf16> to vector<8x512xf32>
    %c0_3 = arith.constant 0 : index
    %c0_4 = arith.constant 0 : index
    %3 = vector.load %arg2[%c0_3, %c0_4] : memref<8x512xbf16, #tpu.memory_space<vmem>>, vector<8x512xbf16>
    %4 = arith.extf %3 : vector<8x512xbf16> to vector<8x512xf32>
    %5 = tpu.iota {dimensions = array<i32: 1>} : vector<1x512xi32>
    %cst = arith.constant dense<0xFF800000> : vector<8xf32>
    %6 = vector.multi_reduction <maximumf>, %0, %cst [1] : vector<8x512xf32> to vector<8xf32>
    %7 = vector.shape_cast %6 : vector<8xf32> to vector<8x1xf32>
    %8 = vector.broadcast %7 : vector<8x1xf32> to vector<8x512xf32>
    %9 = arith.cmpf oeq, %0, %8 : vector<8x512xf32>
    %c512_i32 = arith.constant 512 : i32
    %10 = vector.shape_cast %5 : vector<1x512xi32> to vector<1x512xi32>
    %11 = vector.broadcast %10 : vector<1x512xi32> to vector<8x512xi32>
    %12 = vector.broadcast %c512_i32 : i32 to vector<8x512xi32>
    %13 = arith.select %9, %11, %12 : vector<8x512xi1>, vector<8x512xi32>
    %cst_5 = arith.constant dense<2147483647> : vector<8xi32>
    %14 = vector.multi_reduction <minsi>, %13, %cst_5 [1] : vector<8x512xi32> to vector<8xi32>
    %15 = vector.shape_cast %14 : vector<8xi32> to vector<8x1xi32>
    %16 = vector.broadcast %5 : vector<1x512xi32> to vector<8x512xi32>
    %17 = vector.broadcast %15 : vector<8x1xi32> to vector<8x512xi32>
    %18 = arith.cmpi eq, %16, %17 : vector<8x512xi32>
    %19 = tpu.concatenate %2, %4 in 0 : vector<8x512xf32>, vector<8x512xf32> -> vector<16x512xf32>
    %20 = tpu.concatenate %18, %18 in 0 : vector<8x512xi1>, vector<8x512xi1> -> vector<16x512xi1>
    %cst_6 = arith.constant dense<0xFF800000> : vector<16xf32>
    %21 = vector.multi_reduction <maximumf>, %19, %cst_6 [1] : vector<16x512xf32> to vector<16xf32>
    %22 = vector.shape_cast %21 : vector<16xf32> to vector<16x1xf32>
    %23 = vector.broadcast %22 : vector<16x1xf32> to vector<16x512xf32>
    %24 = arith.subf %19, %23 : vector<16x512xf32>
    %25 = math.exp %24 : vector<16x512xf32>
    %cst_7 = arith.constant dense<0.000000e+00> : vector<16xf32>
    %26 = vector.multi_reduction <add>, %25, %cst_7 [1] : vector<16x512xf32> to vector<16xf32>
    %27 = vector.shape_cast %26 : vector<16xf32> to vector<16x1xf32>
    %28 = math.log %27 : vector<16x1xf32>
    %cst_8 = arith.constant 0.000000e+00 : f32
    %29 = vector.broadcast %cst_8 : f32 to vector<16x512xf32>
    %30 = arith.select %20, %24, %29 : vector<16x512xi1>, vector<16x512xf32>
    %cst_9 = arith.constant dense<0.000000e+00> : vector<16xf32>
    %31 = vector.multi_reduction <add>, %30, %cst_9 [1] : vector<16x512xf32> to vector<16xf32>
    %32 = vector.shape_cast %31 : vector<16xf32> to vector<16x1xf32>
    %c504_i32 = arith.constant 504 : i32
    %33 = vector.broadcast %c504_i32 : i32 to vector<1x512xi32>
    %34 = arith.cmpi slt, %5, %33 : vector<1x512xi32>
    %cst_10 = arith.constant 0.000000e+00 : f32
    %35 = vector.shape_cast %34 : vector<1x512xi1> to vector<1x512xi1>
    %36 = vector.broadcast %35 : vector<1x512xi1> to vector<16x512xi1>
    %37 = vector.broadcast %cst_10 : f32 to vector<16x512xf32>
    %38 = arith.select %36, %24, %37 : vector<16x512xi1>, vector<16x512xf32>
    %cst_11 = arith.constant dense<0.000000e+00> : vector<16xf32>
    %39 = vector.multi_reduction <add>, %38, %cst_11 [1] : vector<16x512xf32> to vector<16xf32>
    %40 = vector.shape_cast %39 : vector<16xf32> to vector<16x1xf32>
    %41 = arith.subf %28, %32 : vector<16x1xf32>
    %cst_12 = arith.constant 0.0019841271 : f32
    %42 = vector.broadcast %cst_12 : f32 to vector<16x1xf32>
    %43 = arith.mulf %40, %42 : vector<16x1xf32>
    %44 = arith.subf %28, %43 : vector<16x1xf32>
    %cst_13 = arith.constant 0.699999988 : f32
    %45 = vector.broadcast %cst_13 : f32 to vector<16x1xf32>
    %46 = arith.mulf %45, %41 : vector<16x1xf32>
    %cst_14 = arith.constant 3.000000e-01 : f32
    %47 = vector.broadcast %cst_14 : f32 to vector<16x1xf32>
    %48 = arith.mulf %47, %44 : vector<16x1xf32>
    %49 = arith.addf %46, %48 : vector<16x1xf32>
    %50 = vector.extract_strided_slice %49 {offsets = [0, 0], sizes = [8, 1], strides = [1, 1]} : vector<16x1xf32> to vector<8x1xf32>
    %51 = vector.shape_cast %50 : vector<8x1xf32> to vector<1x8x1xf32>
    %cst_15 = arith.constant dense<0.000000e+00> : vector<1xf32>
    %52 = vector.multi_reduction <add>, %51, %cst_15 [1, 2] : vector<1x8x1xf32> to vector<1xf32>
    %53 = vector.shape_cast %52 : vector<1xf32> to vector<1x1x1xf32>
    %54 = vector.extract %53[0, 0, 0] : f32 from vector<1x1x1xf32>
    %cst_16 = arith.constant 8.000000e+00 : f32
    %55 = arith.divf %54, %cst_16 : f32
    %56 = vector.extract_strided_slice %49 {offsets = [8, 0], sizes = [8, 1], strides = [1, 1]} : vector<16x1xf32> to vector<8x1xf32>
    %57 = vector.shape_cast %56 : vector<8x1xf32> to vector<1x8x1xf32>
    %cst_17 = arith.constant dense<0.000000e+00> : vector<1xf32>
    %58 = vector.multi_reduction <add>, %57, %cst_17 [1, 2] : vector<1x8x1xf32> to vector<1xf32>
    %59 = vector.shape_cast %58 : vector<1xf32> to vector<1x1x1xf32>
    %60 = vector.extract %59[0, 0, 0] : f32 from vector<1x1x1xf32>
    %cst_18 = arith.constant 8.000000e+00 : f32
    %61 = arith.divf %60, %cst_18 : f32
    %62 = vector.extract_strided_slice %24 {offsets = [0, 0], sizes = [8, 512], strides = [1, 1]} : vector<16x512xf32> to vector<8x512xf32>
    %63 = vector.extract_strided_slice %32 {offsets = [0, 0], sizes = [8, 1], strides = [1, 1]} : vector<16x1xf32> to vector<8x1xf32>
    %64 = vector.broadcast %63 : vector<8x1xf32> to vector<8x512xf32>
    %65 = arith.cmpf ogt, %62, %64 : vector<8x512xf32>
    %66 = arith.extui %65 : vector<8x512xi1> to vector<8x512xi32>
    %67 = arith.sitofp %66 : vector<8x512xi32> to vector<8x512xf32>
    %cst_19 = arith.constant dense<0.000000e+00> : vector<8xf32>
    %68 = vector.multi_reduction <add>, %67, %cst_19 [1] : vector<8x512xf32> to vector<8xf32>
    %69 = vector.shape_cast %68 : vector<8xf32> to vector<8x1xf32>
    %cst_20 = arith.constant 1.000000e+00 : f32
    %70 = vector.broadcast %cst_20 : f32 to vector<8x1xf32>
    %71 = arith.cmpf olt, %69, %70 : vector<8x1xf32>
    %72 = arith.extui %71 : vector<8x1xi1> to vector<8x1xi32>
    %73 = arith.sitofp %72 : vector<8x1xi32> to vector<8x1xf32>
    %74 = vector.shape_cast %73 : vector<8x1xf32> to vector<1x8x1xf32>
    %cst_21 = arith.constant dense<0.000000e+00> : vector<1xf32>
    %75 = vector.multi_reduction <add>, %74, %cst_21 [1, 2] : vector<1x8x1xf32> to vector<1xf32>
    %76 = vector.shape_cast %75 : vector<1xf32> to vector<1x1x1xf32>
    %77 = vector.extract %76[0, 0, 0] : f32 from vector<1x1x1xf32>
    %cst_22 = arith.constant 8.000000e+00 : f32
    %78 = arith.divf %77, %cst_22 : f32
    %cst_23 = arith.constant 1.000000e+02 : f32
    %79 = arith.mulf %78, %cst_23 : f32
    %cst_24 = arith.constant 5.000000e+00 : f32
    %80 = vector.broadcast %cst_24 : f32 to vector<8x1xf32>
    %81 = arith.cmpf olt, %69, %80 : vector<8x1xf32>
    %82 = arith.extui %81 : vector<8x1xi1> to vector<8x1xi32>
    %83 = arith.sitofp %82 : vector<8x1xi32> to vector<8x1xf32>
    %84 = vector.shape_cast %83 : vector<8x1xf32> to vector<1x8x1xf32>
    %cst_25 = arith.constant dense<0.000000e+00> : vector<1xf32>
    %85 = vector.multi_reduction <add>, %84, %cst_25 [1, 2] : vector<1x8x1xf32> to vector<1xf32>
    %86 = vector.shape_cast %85 : vector<1xf32> to vector<1x1x1xf32>
    %87 = vector.extract %86[0, 0, 0] : f32 from vector<1x1x1xf32>
    %cst_26 = arith.constant 8.000000e+00 : f32
    %88 = arith.divf %87, %cst_26 : f32
    %cst_27 = arith.constant 1.000000e+02 : f32
    %89 = arith.mulf %88, %cst_27 : f32
    %90 = tpu.iota {dimensions = array<i32: 1>} : vector<1x128xi32>
    %c0_i32 = arith.constant 0 : i32
    %91 = vector.broadcast %c0_i32 : i32 to vector<1x128xi32>
    %92 = arith.cmpi eq, %90, %91 : vector<1x128xi32>
    %cst_28 = arith.constant 1.000000e+00 : f32
    %cst_29 = arith.constant 0.000000e+00 : f32
    %93 = vector.broadcast %cst_28 : f32 to vector<1x128xf32>
    %94 = vector.broadcast %cst_29 : f32 to vector<1x128xf32>
    %95 = arith.select %92, %93, %94 : vector<1x128xi1>, vector<1x128xf32>
    %96 = vector.broadcast %55 : f32 to vector<1x128xf32>
    %97 = arith.mulf %95, %96 : vector<1x128xf32>
    %c1_i32 = arith.constant 1 : i32
    %98 = vector.broadcast %c1_i32 : i32 to vector<1x128xi32>
    %99 = arith.cmpi eq, %90, %98 : vector<1x128xi32>
    %cst_30 = arith.constant 1.000000e+00 : f32
    %cst_31 = arith.constant 0.000000e+00 : f32
    %100 = vector.broadcast %cst_30 : f32 to vector<1x128xf32>
    %101 = vector.broadcast %cst_31 : f32 to vector<1x128xf32>
    %102 = arith.select %99, %100, %101 : vector<1x128xi1>, vector<1x128xf32>
    %103 = vector.broadcast %61 : f32 to vector<1x128xf32>
    %104 = arith.mulf %102, %103 : vector<1x128xf32>
    %105 = arith.addf %97, %104 : vector<1x128xf32>
    %c2_i32 = arith.constant 2 : i32
    %106 = vector.broadcast %c2_i32 : i32 to vector<1x128xi32>
    %107 = arith.cmpi eq, %90, %106 : vector<1x128xi32>
    %cst_32 = arith.constant 1.000000e+00 : f32
    %cst_33 = arith.constant 0.000000e+00 : f32
    %108 = vector.broadcast %cst_32 : f32 to vector<1x128xf32>
    %109 = vector.broadcast %cst_33 : f32 to vector<1x128xf32>
    %110 = arith.select %107, %108, %109 : vector<1x128xi1>, vector<1x128xf32>
    %111 = vector.broadcast %79 : f32 to vector<1x128xf32>
    %112 = arith.mulf %110, %111 : vector<1x128xf32>
    %113 = arith.addf %105, %112 : vector<1x128xf32>
    %c3_i32 = arith.constant 3 : i32
    %114 = vector.broadcast %c3_i32 : i32 to vector<1x128xi32>
    %115 = arith.cmpi eq, %90, %114 : vector<1x128xi32>
    %cst_34 = arith.constant 1.000000e+00 : f32
    %cst_35 = arith.constant 0.000000e+00 : f32
    %116 = vector.broadcast %cst_34 : f32 to vector<1x128xf32>
    %117 = vector.broadcast %cst_35 : f32 to vector<1x128xf32>
    %118 = arith.select %115, %116, %117 : vector<1x128xi1>, vector<1x128xf32>
    %119 = vector.broadcast %89 : f32 to vector<1x128xf32>
    %120 = arith.mulf %118, %119 : vector<1x128xf32>
    %121 = arith.addf %113, %120 : vector<1x128xf32>
    %c0_36 = arith.constant 0 : index
    %c0_37 = arith.constant 0 : index
    %122 = vector.load %arg3[%c0_36, %c0_37] : memref<1x128xf32, #tpu.memory_space<vmem>>, vector<1x128xf32>
    tpu.vector_store %arg3[%c0_36, %c0_37], %121 {strides = array<i32>} : memref<1x128xf32, #tpu.memory_space<vmem>>, vector<1x128xf32>,
    return
  }
}

</mosaic_0001>

<bundles_post_ra>
// kernel: tpu_custom_call.1
= control target key start
LH: loop header
LB: loop body
LE: loop exit
PB: predicated region body
PF: predicated region fallthrough
CT: control target
= control target key end

     0   :  { %8 = vsyncpa [#allocation3], 0  ;;  %s584_s0 = inlined_call_operand.hbm [shape: f32[8,512], index: 0, kind: input, shape index: {}]   ;;  %s585_s1 = inlined_call_operand.hbm [shape: bf16[8,512], index: 1, kind: input, shape index: {}]   ;;  %s586_s2 = inlined_call_operand.hbm [shape: bf16[8,512], index: 2, kind: input, shape index: {}]   ;;  %s587_s3 = inlined_call_operand.hbm [shape: f32[1,128], index: 3, kind: output, shape index: {}]  }
   0x1   :  { %9 = vsyncpa [#allocation6], 0 }
   0x2   :  { %10 = vsyncpa [#allocation4], 0  ;;  %s455_s12 = smov [#allocation5]   ;;  %s456_s14 = smov [#allocation2]  }
   0x3   :  { %s27_s13 = sshll.u32 %s455_s12, 4  ;;  %s17_s15 = sshll.u32 %s456_s14, 4  ;;  %s28_s13 = int_to_ptr.vmem [resolvable:$true] %s27_s13  ;;  %s18_s15 = int_to_ptr.vmem [resolvable:$true] %s17_s15 }
   0x4   :  { %s377_s16 = scalar_lea.vmem %s28_s13, 256  ;;  %p382_p1 = scmp.lt.s32.totalorder %s28_s13, %s28_s13 }
   0x5   :  { %p378_p0 = scmp.ne.s32.totalorder %s28_s13, %s377_s16  ;;  %p383_p2 = scmp.lt.s32.totalorder %s377_s16, %s377_s16 }
   0x7   :  { %p384_p3 = por %p383_p2, %p382_p1 }
   0x9   :  { %p385_p4 = pnand %p384_p3, %p378_p0 }
   0xb   :  { %388 = shalt.err (!%p385_p4)
}
   0xc   :  { %30 = dma.hbm_to_vmem [thread:$0]  %s585_s1, 256, %s28_s13, [#allocation6]  }
   0xd   :  { %s397_s19 = scalar_lea.vmem %s18_s15, 512  ;;  %p402_p6 = scmp.lt.s32.totalorder %s18_s15, %s18_s15 }
   0xe   :  { %p398_p5 = scmp.ne.s32.totalorder %s18_s15, %s397_s19  ;;  %p403_p7 = scmp.lt.s32.totalorder %s397_s19, %s397_s19 }
  0x10   :  { %p404_p8 = por %p403_p7, %p402_p6 }
  0x12   :  { %p405_p9 = pnand %p404_p8, %p398_p5 }
  0x14   :  { %408 = shalt.err (!%p405_p9)
}
  0x15   :  { %20 = dma.hbm_to_vmem [thread:$0]  %s584_s0, 512, %s18_s15, [#allocation3]  }
  0x16   :  { %s457_s22 = smov [#allocation7]  }
  0x17   :  { %s37_s23 = sshll.u32 %s457_s22, 4  ;;  %s38_s23 = int_to_ptr.vmem [resolvable:$true] %s37_s23 }
  0x18   :  { %s417_s24 = scalar_lea.vmem %s38_s23, 256  ;;  %p422_p11 = scmp.lt.s32.totalorder %s38_s23, %s38_s23 }
  0x19   :  { %p418_p10 = scmp.ne.s32.totalorder %s38_s23, %s417_s24  ;;  %p423_p12 = scmp.lt.s32.totalorder %s417_s24, %s417_s24 }
  0x1b   :  { %p424_p13 = por %p423_p12, %p422_p11 }
  0x1d   :  { %p425_p0 = pnand %p424_p13, %p418_p10 }
  0x1f   :  { %428 = shalt.err (!%p425_p0)
}
  0x20   :  { %40 = dma.hbm_to_vmem [thread:$0]  %s586_s2, 256, %s38_s23, [#allocation6]  }
  0x21   :  { %449 = dma.done.wait [#allocation3], 512  }
  0x22   :  { %450 = vsyncadd [#allocation3], 4294966784 }
  0x23   :  { %451 = dma.done.wait [#allocation6], 512  }
  0x24   :  { %452 = vsyncadd [#allocation6], 4294966784  ;;  %v50_v0 = vld [vmem:[#allocation2] sm:$0xff]  ;;  %v51_v1 = vld [vmem:[#allocation2 + $0x8] sm:$0xff]  ;;  %v66_v7 = vlaneseq  ;;  %s459_s7 = smov [#allocation8]  }
  0x25   :  { %v52_v2 = vld [vmem:[#allocation2 + $0x10] sm:$0xff]  ;;  %v53_v3 = vld [vmem:[#allocation2 + $0x18] sm:$0xff]  ;;  %v71_v4 = vmax.f32 %v50_v0, %v51_v1  ;;  %v54_v31 = vld [vmem:[#allocation5] sm:$0xff]  ;;  %s320_s8 = sshll.u32 %s459_s7, 4  ;;  %s321_s8 = int_to_ptr.vmem [resolvable:$true] %s320_s8 }
  0x26   :  { %v72_v5 = vmax.f32 %v52_v2, %v53_v3  ;;  %v489_v8 = vand.u32 127, %v66_v7  ;;  %v60_v9 = vld [vmem:[#allocation7] sm:$0xff]  ;;  %v61_v14 = vld [vmem:[#allocation7 + $0x8] sm:$0xff]  ;;  %v55_v32 = vld [vmem:[#allocation5 + $0x8] sm:$0xff]  ;;  %v56_v33 = vunpack.c.l.bf16 %v54_v31  ;;  %v57_v34 = vunpack.c.h.bf16 %v54_v31  ;;  %s429_s9 = scalar_lea.vmem %s321_s8, 16  ;;  %s433_s10 = scalar_lea.vmem %s321_s8, 32 }
  0x27   :  { %v62_v15 = vunpack.c.l.bf16 %v60_v9  ;;  %v63_v16 = vunpack.c.h.bf16 %v60_v9  ;;  %v64_v21 = vunpack.c.l.bf16 %v61_v14  ;;  %v65_v22 = vunpack.c.h.bf16 %v61_v14  ;;  %p430_p1 = scmp.ne.s32.totalorder %s321_s8, %s429_s9  ;;  %p434_p2 = scmp.lt.s32.totalorder %s321_s8, %s321_s8 }
  0x28   :  { %v73_v6 = vmax.f32 %v71_v4, %v72_v5  ;;  %v492_v10 = vadd.s32 128, %v489_v8  ;;  %v495_v11 = vadd.s32 256, %v489_v8  ;;  %v498_v12 = vadd.s32 384, %v489_v8  ;;  %p435_p3 = scmp.lt.s32.totalorder %s433_s10, %s429_s9 }
  0x29   :  { %v113_v27 = vmax.f32 %v62_v15, %v64_v21  ;;  %v114_v28 = vmax.f32 %v63_v16, %v65_v22  ;;  %v58_v35 = vunpack.c.l.bf16 %v55_v32  ;;  %v59_v36 = vunpack.c.h.bf16 %v55_v32 }
  0x2a   :  { %74 = vmax.xlane.f32.xlu0 %v73_v6  ;;  %vm177_vm12 = vcmp.lt.s32.totalorder %v498_v12, 504  ;;  %p436_p4 = por %p435_p3, %p434_p2 }
  0x2b   :  { %v115_v30 = vmax.f32 %v113_v27, %v114_v28  ;;  %v108_v38 = vmax.f32 %v56_v33, %v58_v35  ;;  %v109_v39 = vmax.f32 %v57_v34, %v59_v36 }
  0x2c   :  { %p437_p5 = pnand %p436_p4, %p430_p1 }
  0x2d   :  { %v110_v43 = vmax.f32 %v108_v38, %v109_v39 }
  0xb3   :  { %v75_v13 = vpop.xlane.xlu0 %74 }
  0xb4   :  { %vm76_vm0 = vcmp.eq.f32.partialorder %v50_v0, %v75_v13  ;;  %vm77_vm1 = vcmp.eq.f32.partialorder %v51_v1, %v75_v13  ;;  %vm78_vm2 = vcmp.eq.f32.partialorder %v52_v2, %v75_v13  ;;  %vm79_vm3 = vcmp.eq.f32.partialorder %v53_v3, %v75_v13 }
  0xb5   :  { %v80_v17 = vsel %vm76_vm0, %v489_v8, 512  ;;  %v81_v18 = vsel %vm77_vm1, %v492_v10, 512  ;;  %v82_v19 = vsel %vm78_vm2, %v495_v11, 512  ;;  %v83_v20 = vsel %vm79_vm3, %v498_v12, 512 }
  0xb6   :  { %vm84_vm4 = vcmp.lt.s32.totalorder %v80_v17, %v81_v18  ;;  %vm86_vm5 = vcmp.lt.s32.totalorder %v82_v19, %v83_v20  ;;  %vm216_vm1 = vcmask 7168  }
  0xb7   :  { %v85_v23 = vsel %vm84_vm4, %v80_v17, %v81_v18  ;;  %v87_v24 = vsel %vm86_vm5, %v82_v19, %v83_v20  ;;  %vm294_vm4 = vcmp.eq.s32.totalorder %v489_v8, 0  ;;  %vm298_vm5 = vcmp.eq.s32.totalorder %v489_v8, 1 }
  0xb8   :  { %vm88_vm6 = vcmp.lt.s32.totalorder %v85_v23, %v87_v24 }
  0xb9   :  { %v89_v25 = vsel %vm88_vm6, %v85_v23, %v87_v24  ;;  %vm303_vm6 = vcmp.eq.s32.totalorder %v489_v8, 2 }
  0xba   :  { %v91_v26 = vshra.s32 %v89_v25, 16  ;;  %v90_v37 = vand.u32 65535, %v89_v25 }
  0xbc   :  { %v93_v29 = vcvt.s32.f32 %v91_v26  ;;  %v92_v41 = vcvt.s32.f32 %v90_v37 }
  0xbe   :  { %94 = vmin.xlane.f32.xlu0 %v93_v29 }
  0xc2   :  { %116 = vmax.xlane.f32.xlu0 %v115_v30 }
 0x147   :  { %v95_v40 = vpop.xlane.xlu0 %94 }
 0x148   :  { %vm96_vm7 = vcmp.eq.f32.partialorder %v93_v29, %v95_v40  ;;  %v101_v53 = vcvt.f32.s32 %v95_v40 }
 0x149   :  { %v97_v42 = vsel %vm96_vm7, %v92_v41, inf  ;;  %vm308_vm7 = vcmp.eq.s32.totalorder %v489_v8, 3 }
 0x14a   :  { %98 = vmin.xlane.f32.xlu1 %v97_v42  ;;  %v102_v55 = vshll.u32 %v101_v53, 16 }
 0x14b   :  { %v117_v44 = vpop.xlane.xlu0 %116 }
 0x14c   :  { %v122_v45 = vsub.f32 %v62_v15, %v117_v44  ;;  %v123_v46 = vsub.f32 %v63_v16, %v117_v44  ;;  %v504_v48 = vsub.f32 %v64_v21, %v117_v44  ;;  %v506_v50 = vsub.f32 %v65_v22, %v117_v44 }
 0x14e   :  { %111 = vmax.xlane.f32.xlu1 %v110_v43  ;;  %v134_v47 = vmul.f32 1.442695, %v122_v45  ;;  %v136_v49 = vmul.f32 1.442695, %v123_v46  ;;  %v138_v51 = vmul.f32 1.442695, %v504_v48  ;;  %v199_v17 = vadd.f32 %v123_v46, %v122_v45 }
 0x14f   :  { %v140_v52 = vmul.f32 1.442695, %v506_v50  ;;  %v193_v23 = vsel %vm177_vm12, %v506_v50, 0.0  ;;  %v458_v43 = vmov 0.0  }
 0x150   :  { %349 = vpow2.f32 %v134_v47  ;;  %v200_v22 = vadd.f32 %v199_v17, %v504_v48 }
 0x151   :  { %351 = vpow2.f32 %v136_v49 }
 0x152   :  { %353 = vpow2.f32 %v138_v51  ;;  %v201_v24 = vadd.f32 %v200_v22, %v193_v23 }
 0x153   :  { %355 = vpow2.f32 %v140_v52 }
 0x15d   :  { %v350_v57 = vpop.eup %349 }
 0x15e   :  { %v352_v59 = vpop.eup %351 }
 0x15f   :  { %v147_v3 = vadd.f32 %v352_v59, %v350_v57  ;;  %v354_v4 = vpop.eup %353 }
 0x160   :  { %v356_v18 = vpop.eup %355 }
 0x161   :  { %v148_v16 = vadd.f32 %v354_v4, %v147_v3 }
 0x163   :  { %v149_v21 = vadd.f32 %v356_v18, %v148_v16 }
 0x1d3   :  { %v99_v54 = vpop.xlane.xlu1 %98 }
 0x1d4   :  { %v100_v56 = vcvt.f32.s32 %v99_v54 }
 0x1d6   :  { %v103_v58 = vadd.s32 %v102_v55, %v100_v56 }
 0x1d7   :  { %v112_v60 = vpop.xlane.xlu1 %111 }
 0x1d8   :  { %v510_v61 = vsub.f32 %v56_v33, %v112_v60  ;;  %v512_v62 = vsub.f32 %v57_v34, %v112_v60  ;;  %v514_v63 = vsub.f32 %v58_v35, %v112_v60  ;;  %v516_v0 = vsub.f32 %v59_v36, %v112_v60 }
 0x1d9   :  { %vm104_vm8 = vcmp.eq.s32.totalorder %v489_v8, %v103_v58  ;;  %vm105_vm9 = vcmp.eq.s32.totalorder %v492_v10, %v103_v58  ;;  %vm106_vm10 = vcmp.eq.s32.totalorder %v495_v11, %v103_v58  ;;  %vm107_vm11 = vcmp.eq.s32.totalorder %v498_v12, %v103_v58 }
 0x1da   :  { %v126_v1 = vmul.f32 1.442695, %v510_v61  ;;  %v128_v2 = vmul.f32 1.442695, %v512_v62  ;;  %v130_v5 = vmul.f32 1.442695, %v514_v63  ;;  %v194_v28 = vadd.f32 %v512_v62, %v510_v61 }
 0x1db   :  { %v156_v6 = vsel %vm104_vm8, %v510_v61, 0.0  ;;  %v157_v7 = vsel %vm105_vm9, %v512_v62, 0.0  ;;  %v132_v13 = vmul.f32 1.442695, %v516_v0  ;;  %v158_v14 = vsel %vm106_vm10, %v514_v63, 0.0 }
 0x1dc   :  { %357 = vpow2.f32 %v126_v1  ;;  %v164_v9 = vadd.f32 %v157_v7, %v156_v6  ;;  %v159_v19 = vsel %vm107_vm11, %v516_v0, 0.0  ;;  %v160_v30 = vsel %vm104_vm8, %v122_v45, 0.0 }
 0x1dd   :  { %359 = vpow2.f32 %v128_v2  ;;  %v161_v31 = vsel %vm105_vm9, %v123_v46, 0.0  ;;  %v195_v35 = vadd.f32 %v194_v28, %v514_v63  ;;  %v189_v37 = vsel %vm177_vm12, %v516_v0, 0.0 }
 0x1de   :  { %v165_v15 = vadd.f32 %v164_v9, %v158_v14  ;;  %361 = vpow2.f32 %v130_v5  ;;  %v169_v36 = vadd.f32 %v161_v31, %v160_v30  ;;  %v162_v38 = vsel %vm106_vm10, %v504_v48, 0.0 }
 0x1df   :  { %363 = vpow2.f32 %v132_v13  ;;  %v196_v39 = vadd.f32 %v195_v35, %v189_v37  ;;  %v163_v10 = vsel %vm107_vm11, %v506_v50, 0.0 }
 0x1e0   :  { %v166_v20 = vadd.f32 %v165_v15, %v159_v19  ;;  %v170_v40 = vadd.f32 %v169_v36, %v162_v38 }
 0x1e2   :  { %167 = vadd.xlane.f32.xlu1 %v166_v20  ;;  %v171_v41 = vadd.f32 %v170_v40, %v163_v10 }
 0x1e6   :  { %150 = vadd.xlane.f32.xlu1 %v149_v21 }
 0x1e9   :  { %v358_v25 = vpop.eup %357 }
 0x1ea   :  { %v360_v26 = vpop.eup %359  ;;  %202 = vadd.xlane.f32.xlu1 %v201_v24 }
 0x1eb   :  { %v142_v27 = vadd.f32 %v360_v26, %v358_v25  ;;  %v362_v29 = vpop.eup %361 }
 0x1ec   :  { %v364_v33 = vpop.eup %363 }
 0x1ed   :  { %v143_v32 = vadd.f32 %v362_v29, %v142_v27 }
 0x1ef   :  { %v144_v34 = vadd.f32 %v364_v33, %v143_v32 }
 0x1f1   :  { %145 = vadd.xlane.f32.xlu0 %v144_v34 }
 0x1f5   :  { %197 = vadd.xlane.f32.xlu0 %v196_v39 }
 0x1f9   :  { %172 = vadd.xlane.f32.xlu0 %v171_v41 }
 0x26b   :  { %v168_v42 = vpop.xlane.xlu1 %167 }
 0x26c   :  { %vm243_vm13 = vcmp.gt.f32.partialorder %v510_v61, %v168_v42  ;;  %vm244_vm14 = vcmp.gt.f32.partialorder %v512_v62, %v168_v42  ;;  %vm245_vm15 = vcmp.gt.f32.partialorder %v514_v63, %v168_v42  ;;  %vm246_vm0 = vcmp.gt.f32.partialorder %v516_v0, %v168_v42 }
 0x26d   :  { %v330_v11 = vsel %vm243_vm13, 1.0, %v458_v43  ;;  %v331_v44 = vsel %vm244_vm14, 1.0, %v458_v43  ;;  %v332_v12 = vsel %vm245_vm15, 1.0, %v458_v43  ;;  %v333_v48 = vsel %vm246_vm0, 1.0, %v458_v43 }
 0x26e   :  { %v255_v45 = vadd.f32 %v331_v44, %v330_v11  ;;  %v295_v44 = vsel %vm294_vm4, 1.0, %v458_v43 }
 0x26f   :  { %v151_v46 = vpop.xlane.xlu1 %150 }
 0x270   :  { %365 = vlog2.f32 %v151_v46  ;;  %v256_v47 = vadd.f32 %v332_v12, %v255_v45  ;;  %v299_v46 = vsel %vm298_vm5, 1.0, %v458_v43 }
 0x272   :  { %v257_v49 = vadd.f32 %v333_v48, %v256_v47 }
 0x273   :  { %v203_v50 = vpop.xlane.xlu1 %202 }
 0x274   :  { %258 = vadd.xlane.f32.xlu1 %v257_v49  ;;  %v207_v52 = vmul.f32 0.001984127, %v203_v50  ;;  %v304_v49 = vsel %vm303_vm6, 1.0, %v458_v43 }
 0x27a   :  { %v146_v51 = vpop.xlane.xlu0 %145 }
 0x27b   :  { %367 = vlog2.f32 %v146_v51  ;;  %v309_v51 = vsel %vm308_vm7, 1.0, %v458_v43 }
 0x27d   :  { %v366_v53 = vpop.eup %365 }
 0x27e   :  { %v155_v54 = vmul.f32 0.6931472, %v366_v53  ;;  %v198_v55 = vpop.xlane.xlu0 %197 }
 0x27f   :  { %v206_v0 = vmul.f32 0.001984127, %v198_v55 }
 0x280   :  { %v209_v56 = vsub.f32 %v155_v54, %v207_v52 }
 0x282   :  { %v173_v57 = vpop.xlane.xlu0 %172  ;;  %v213_v58 = vmul.f32 0.3, %v209_v56 }
 0x283   :  { %v205_v59 = vsub.f32 %v155_v54, %v173_v57 }
 0x285   :  { %v211_v60 = vmul.f32 0.7, %v205_v59 }
 0x287   :  { %v215_v61 = vadd.f32 %v213_v58, %v211_v60 }
 0x288   :  { %v368_v62 = vpop.eup %367 }
 0x289   :  { %v153_v63 = vmul.f32 0.6931472, %v368_v62  ;;  %v230_v1 = vsel %vm216_vm1, %v215_v61, 0.0 }
 0x28a   :  { %231 = vadd.xlane.f32.xlu1 %v230_v1 }
 0x28b   :  { %v208_v2 = vsub.f32 %v153_v63, %v206_v0  ;;  %v204_v3 = vsub.f32 %v153_v63, %v168_v42 }
 0x28d   :  { %v212_v4 = vmul.f32 0.3, %v208_v2  ;;  %v210_v5 = vmul.f32 0.7, %v204_v3 }
 0x28f   :  { %v214_v6 = vadd.f32 %v212_v4, %v210_v5 }
 0x291   :  { %v217_v7 = vsel %vm216_vm1, %v214_v6, 0.0 }
 0x292   :  { %218 = vadd.xlane.f32.xlu0 %v217_v7 }
 0x2fd   :  { %v259_v9 = vpop.xlane.xlu1 %258 }
 0x2fe   :  { %vm260_vm2 = vcmp.lt.f32.partialorder %v259_v9, 1.0  ;;  %vm277_vm3 = vcmp.lt.f32.partialorder %v259_v9, 5.0 }
 0x2ff   :  { %v334_v13 = vsel %vm260_vm2, 1.0, %v458_v43  ;;  %v335_v14 = vsel %vm277_vm3, 1.0, %v458_v43 }
 0x300   :  { %v263_v15 = vsel %vm216_vm1, %v334_v13, 0.0  ;;  %v280_v16 = vsel %vm216_vm1, %v335_v14, 0.0 }
 0x301   :  { %264 = vadd.xlane.f32.xlu0 %v263_v15  ;;  %281 = vadd.xlane.f32.xlu1 %v280_v16 }
 0x313   :  { %v232_v17 = vpop.xlane.xlu1 %231 }
 0x314   :  { %v233_v18 = vrot.slane %v232_v17, 4 }
 0x316   :  { %v234_v19 = vadd.f32 %v233_v18, %v232_v17 }
 0x318   :  { %v235_v20 = vrot.slane %v234_v19, 2 }
 0x31a   :  { %v236_v24 = vadd.f32 %v235_v20, %v234_v19 }
 0x31b   :  { %v219_v21 = vpop.xlane.xlu0 %218 }
 0x31c   :  { %v220_v22 = vrot.slane %v219_v21, 4  ;;  %v237_v27 = vrot.slane %v236_v24, 1 }
 0x31e   :  { %v221_v23 = vadd.f32 %v220_v22, %v219_v21  ;;  %v238_v30 = vadd.f32 %v237_v27, %v236_v24 }
 0x320   :  { %v222_v25 = vrot.slane %v221_v23, 2 }
 0x322   :  { %v223_v26 = vadd.f32 %v222_v25, %v221_v23 }
 0x324   :  { %v224_v28 = vrot.slane %v223_v26, 1 }
 0x326   :  { %v225_v29 = vadd.f32 %v224_v28, %v223_v26 }
 0x328   :  { %336 = vpush %v225_v29 }
 0x329   :  { %338 = vpush %v238_v30 }
 0x359   :  { %s337_s0 = spop %336 }
 0x35a   :  { %s339_s2 = spop %338  ;;  %s229_s26 = smul.f32 0.125, %s337_s0 }
 0x35b   :  { %s242_s27 = smul.f32 0.125, %s339_s2 }
 0x35c   :  { %v296_v45 = vstv %s229_s26 }
 0x35d   :  { %v300_v12 = vstv %s242_s27  ;;  %v297_v47 = vmul.f32 %v296_v45, %v295_v44 }
 0x35e   :  { %v301_v48 = vmul.f32 %v300_v12, %v299_v46 }
 0x360   :  { %v302_v52 = vadd.f32 %v301_v48, %v297_v47 }
 0x38a   :  { %v282_v31 = vpop.xlane.xlu1 %281  ;;  %v265_v32 = vpop.xlane.xlu0 %264 }
 0x38b   :  { %v283_v33 = vrot.slane %v282_v31, 4  ;;  %v266_v34 = vrot.slane %v265_v32, 4 }
 0x38d   :  { %v284_v35 = vadd.f32 %v283_v33, %v282_v31  ;;  %v267_v36 = vadd.f32 %v266_v34, %v265_v32 }
 0x38f   :  { %v285_v37 = vrot.slane %v284_v35, 2  ;;  %v268_v38 = vrot.slane %v267_v36, 2 }
 0x391   :  { %v286_v39 = vadd.f32 %v285_v37, %v284_v35  ;;  %v269_v40 = vadd.f32 %v268_v38, %v267_v36 }
 0x393   :  { %v270_v10 = vrot.slane %v269_v40, 1  ;;  %v287_v41 = vrot.slane %v286_v39, 1 }
 0x395   :  { %v271_v42 = vadd.f32 %v270_v10, %v269_v40  ;;  %v288_v11 = vadd.f32 %v287_v41, %v286_v39 }
 0x397   :  { %340 = vpush %v271_v42 }
 0x398   :  { %342 = vpush %v288_v11 }
 0x3c8   :  { %s341_s28 = spop %340 }
 0x3c9   :  { %s275_s29 = smul.f32 0.125, %s341_s28  ;;  %s343_s30 = spop %342 }
 0x3ca   :  { %s292_s4 = smul.f32 0.125, %s343_s30 }
 0x3cb   :  { %s276_s5 = smul.f32 100.0, %s275_s29 }
 0x3cc   :  { %s293_s6 = smul.f32 100.0, %s292_s4 }
 0x3cd   :  { %v305_v50 = vstv %s276_s5 }
 0x3ce   :  { %v306_v53 = vmul.f32 %v305_v50, %v304_v49  ;;  %v310_v54 = vstv %s293_s6 }
 0x3cf   :  { %v311_v56 = vmul.f32 %v310_v54, %v309_v51 }
 0x3d0   :  { %v307_v55 = vadd.f32 %v306_v53, %v302_v52 }
 0x3d2   :  { %v312_v57 = vadd.f32 %v311_v56, %v307_v55 }
 0x3d4   :  { %313 = vst [vmem:[#allocation8] sm:$0x1] %v312_v57 }
 0x3d5   :  { %440 = shalt.err (!%p437_p5)
}
 0x3d6   :  { %323 = dma.vmem_to_hbm [thread:$0]  %s321_s8, 16, %s587_s3, [#allocation4]  }
 0x3d7   :  { %453 = dma.done.wait [#allocation4], 16  }
 0x3d8   :  { %454 = vsyncadd [#allocation4], 4294967280 }
 0x3d9   :  { %327 = vsyncpa [#allocation3], 1 }
 0x3da   :  { %328 = vsyncpa [#allocation6], 1 }
 0x3db   :  { %329 = vsyncpa [#allocation4], 1 }

</bundles_post_ra>
